<compile_context>
chip_gen: v6e
topology: v6e:2x2x1
jax: 0.10.0
libtpu: 0.0.40
codegen_flags: <defaults>
</compile_context>

<pallas_src>
import functools

import jax
import jax.numpy as jnp
from jax.experimental import pallas as pl
from jax.experimental.pallas import tpu as pltpu


def _round_up(x, m):
    return (x + m - 1) // m * m


def _gcn_kernel_proj_first(f_out, text_ref, adj_ref, w_ref, bias_ref, out_ref, acc_ref):
    """acc += adj_tile @ (text_k_tile @ w_aug); F_out <= F_in ordering."""
    k = pl.program_id(2)

    @pl.when(k == 0)
    def _():
        acc_ref[...] = jnp.zeros_like(acc_ref)

    # (T, F_out_pad) hidden slice for this K tile; column `f_out` is the fused
    # "ones" column that carries the adjacency row-sum through the second matmul.
    hidden = jnp.dot(text_ref[0], w_ref[...], preferred_element_type=jnp.float32)
    acc_ref[...] += jnp.dot(adj_ref[0], hidden, preferred_element_type=jnp.float32)

    @pl.when(k == pl.num_programs(2) - 1)
    def _():
        acc = acc_ref[...]
        denom = acc[:, f_out:f_out + 1] + 1.0          # fused row-sum + 1
        inv = pl.reciprocal(denom, approx=True)        # EUP; broadcasted multiply below
        out_ref[0] = (acc * inv + bias_ref[...].astype(jnp.float32)).astype(out_ref.dtype)


def _gcn_kernel_agg_first(f_out, text_ref, adj_ref, w_ref, bias_ref, out_ref, acc_ref):
    """acc += adj_tile @ text_k_tile; project with w at finalize; F_in < F_out ordering."""
    k = pl.program_id(2)

    @pl.when(k == 0)
    def _():
        acc_ref[...] = jnp.zeros_like(acc_ref)

    acc_ref[...] += jnp.dot(adj_ref[0], text_ref[0], preferred_element_type=jnp.float32)

    @pl.when(k == pl.num_programs(2) - 1)
    def _():
        agg = jnp.dot(acc_ref[...], w_ref[...], preferred_element_type=jnp.float32)
        denom = agg[:, f_out:f_out + 1] + 1.0
        inv = pl.reciprocal(denom, approx=True)
        out_ref[0] = (agg * inv + bias_ref[...].astype(jnp.float32)).astype(out_ref.dtype)


def graph_convolution(text, adj, w, bias=None):
    """Pallas GCN forward.

    text: [B, N, F_in]   adj: [B, N, N]   w: [F_in, F_out]   bias: [1, F_out] or None
    returns: [B, N, F_out] float32
    """
    B, N, F_in = text.shape
    assert adj.shape == (B, N, N)
    F_in_w, F_out = w.shape
    assert F_in_w == F_in

    # ---- Lane-dense feature padding (>=128 multiples) with one spare column
    #      reserved for the fused row-sum trick.
    F_in_pad = _round_up(F_in + 1, 128)
    F_out_pad = _round_up(F_out + 1, 128)

    # ---- Node tile: full (8-padded) extent for small N, else multiples of 256
    #      sized for the 256x256 MXU; a (T,T) f32 adj tile is <=1 MiB, so the
    #      double-buffered working set stays well inside the default scoped VMEM
    #      on v5e/v6e and v7x's 64 MiB.
    if N <= 256:
        T = _round_up(N, 8)
    else:
        T = 512 if N >= 512 else 256
    N_pad = _round_up(N, T)

    f32 = jnp.float32

    # Zero-pad; keep storage dtypes (bf16 inputs stay bf16 on the MXU).
    text_p = jnp.zeros((B, N_pad, F_in_pad), dtype=text.dtype)
    text_p = text_p.at[:, :N, :F_in].set(text)
    text_p = text_p.at[:, :, F_in].set(1.0)            # "ones" feature column

    adj_p = jnp.zeros((B, N_pad, N_pad), dtype=adj.dtype)
    adj_p = adj_p.at[:, :N, :N].set(adj)

    w_p = jnp.zeros((F_in_pad, F_out_pad), dtype=w.dtype)
    w_p = w_p.at[:F_in, :F_out].set(w)
    w_p = w_p.at[F_in, F_out].set(1.0)                 # passes the ones column through

    bias_p = jnp.zeros((1, F_out_pad), dtype=f32 if bias is None else bias.dtype)
    if bias is not None:
        bias_p = bias_p.at[:, :F_out].set(bias)

    # ---- Matmul-order selection from static (padded) shapes.
    project_first = F_out_pad <= F_in_pad
    acc_cols = F_out_pad if project_first else F_in_pad
    kernel = functools.partial(
        _gcn_kernel_proj_first if project_first else _gcn_kernel_agg_first, F_out)

    grid = (B, N_pad // T, N_pad // T)   # (batch, node-row tiles, K tiles)

    out_p = pl.pallas_call(
        kernel,
        out_shape=jax.ShapeDtypeStruct((B, N_pad, F_out_pad), f32),
        grid_spec=pltpu.PrefetchScalarGridSpec(
            num_scalar_prefetch=0,
            grid=grid,
            in_specs=[
                pl.BlockSpec((1, T, F_in_pad), lambda b, i, k: (b, k, 0)),    # text K slice
                pl.BlockSpec((1, T, T), lambda b, i, k: (b, i, k)),           # adj tile
                pl.BlockSpec((F_in_pad, F_out_pad), lambda b, i, k: (0, 0)),  # resident w
                pl.BlockSpec((1, F_out_pad), lambda b, i, k: (0, 0)),         # resident bias
            ],
            out_specs=pl.BlockSpec((1, T, F_out_pad), lambda b, i, k: (b, i, 0)),
            scratch_shapes=[pltpu.VMEM((T, acc_cols), f32)],
        ),
        compiler_params=pltpu.CompilerParams(
            dimension_semantics=("parallel", "parallel", "arbitrary"),
        ),
    )(text_p, adj_p, w_p, bias_p)

    return out_p[:, :N, :F_out]


def _reference(text, adj, w, bias):
    text = text.astype(jnp.float32)
    adj = adj.astype(jnp.float32)
    hidden = jnp.matmul(text, w.astype(jnp.float32))
    denom = jnp.sum(adj, axis=2, keepdims=True) + 1.0
    out = jnp.matmul(adj, hidden) / denom
    return out + bias.astype(jnp.float32)


if __name__ == "__main__":
    key = jax.random.PRNGKey(0)

    def run_case(B, N, F_in, F_out, case_key):
        k_text, k_adj, k_w, k_b = jax.random.split(case_key, 4)
        text = jax.random.normal(k_text, (B, N, F_in), dtype=jnp.float32)
        adj = jax.random.uniform(k_adj, (B, N, N), dtype=jnp.float32)
        w = jax.random.normal(k_w, (F_in, F_out), dtype=jnp.float32) * 0.1
        bias = jax.random.normal(k_b, (1, F_out), dtype=jnp.float32) * 0.1

        out = graph_convolution(text, adj, w, bias)
        jax.block_until_ready(out)

        ref = _reference(text, adj, w, bias)
        assert out.shape == (B, N, F_out)
        assert jnp.allclose(out, ref, atol=2e-3, rtol=2e-3), (
            f"mismatch vs reference for shapes {(B, N, F_in, F_out)}")
        return out

    k1, k2, k3 = jax.random.split(key, 3)
    # Small demo shapes consistent with the module (single node tile).
    run_case(2, 16, 32, 32, k1)
    # Multi-tile path: node-row tiling + K accumulation (grid (B, 2, 2)).
    run_case(2, 320, 64, 48, k2)
    # F_out > F_in -> aggregate-then-project ordering.
    run_case(2, 16, 32, 160, k3)

    print("KERNEL_OK")
</pallas_src>

<mosaic_0001>
module attributes {stable_mosaic.version = 11 : i64} {
  func.func @_gcn_kernel_proj_first(%arg0: i32, %arg1: i32, %arg2: i32, %arg3: memref<1x16x128xf32, #tpu.memory_space<vmem>>, %arg4: memref<1x16x16xf32, #tpu.memory_space<vmem>>, %arg5: memref<128x128xf32, #tpu.memory_space<vmem>>, %arg6: memref<1x128xf32, #tpu.memory_space<vmem>>, %arg7: memref<1x16x128xf32, #tpu.memory_space<vmem>>, %arg8: memref<16x128xf32, #tpu.memory_space<vmem>>) attributes {dimension_semantics = [#tpu.dimension_semantics<parallel>, #tpu.dimension_semantics<parallel>, #tpu.dimension_semantics<arbitrary>], iteration_bounds = array<i64: 2, 1, 1>, scalar_prefetch = 0 : i64, scratch_operands = 1 : i64, tpu.core_type = #tpu.core_type<tc>, window_params = [{transform_indices = @transform_0, window_bounds = array<i64: 1, 16, 128>}, {transform_indices = @transform_1, window_bounds = array<i64: 1, 16, 16>}, {pipeline_mode = #tpu.pipeline_mode<synchronous>, transform_indices = @transform_2, window_bounds = array<i64: 128, 128>}, {pipeline_mode = #tpu.pipeline_mode<synchronous>, transform_indices = @transform_3, window_bounds = array<i64: 1, 128>}, {transform_indices = @transform_4, window_bounds = array<i64: 1, 16, 128>}]} {
    %c0_i32 = arith.constant 0 : i32
    %0 = arith.cmpi eq, %arg2, %c0_i32 : i32
    %1 = arith.extui %0 : i1 to i32
    %c0_i32_0 = arith.constant 0 : i32
    %2 = arith.cmpi ne, %1, %c0_i32_0 : i32
    scf.if %2 {
      %cst_15 = arith.constant 0.000000e+00 : f32
      %16 = vector.broadcast %cst_15 : f32 to vector<16x128xf32>
      %c0_16 = arith.constant 0 : index
      %c0_17 = arith.constant 0 : index
      %17 = vector.load %arg8[%c0_16, %c0_17] : memref<16x128xf32, #tpu.memory_space<vmem>>, vector<16x128xf32>
      tpu.vector_store %arg8[%c0_16, %c0_17], %16 {strides = array<i32>} : memref<16x128xf32, #tpu.memory_space<vmem>>, vector<16x128xf32>,
    } else {
    }
    %c0 = arith.constant 0 : index
    %c0_1 = arith.constant 0 : index
    %c0_2 = arith.constant 0 : index
    %3 = vector.load %arg3[%c0, %c0_1, %c0_2] : memref<1x16x128xf32, #tpu.memory_space<vmem>>, vector<1x16x128xf32>
    %4 = vector.shape_cast %3 : vector<1x16x128xf32> to vector<16x128xf32>
    %c0_3 = arith.constant 0 : index
    %c0_4 = arith.constant 0 : index
    %5 = vector.load %arg5[%c0_3, %c0_4] : memref<128x128xf32, #tpu.memory_space<vmem>>, vector<128x128xf32>
    %cst = arith.constant dense<0.000000e+00> : vector<16x128xf32>
    %6 = tpu.matmul %4, %5, %cst {dimension_numbers = #tpu.dot_dimension_numbers<[1], [0], [0], [1], [0, 0, 1, 1], [], []>} : vector<16x128xf32>, vector<128x128xf32>, vector<16x128xf32> -> vector<16x128xf32>
    %c0_5 = arith.constant 0 : index
    %c0_6 = arith.constant 0 : index
    %7 = vector.load %arg8[%c0_5, %c0_6] : memref<16x128xf32, #tpu.memory_space<vmem>>, vector<16x128xf32>
    %c0_7 = arith.constant 0 : index
    %c0_8 = arith.constant 0 : index
    %c0_9 = arith.constant 0 : index
    %8 = vector.load %arg4[%c0_7, %c0_8, %c0_9] : memref<1x16x16xf32, #tpu.memory_space<vmem>>, vector<1x16x16xf32>
    %9 = vector.shape_cast %8 : vector<1x16x16xf32> to vector<16x16xf32>
    %cst_10 = arith.constant dense<0.000000e+00> : vector<16x128xf32>
    %10 = tpu.matmul %9, %6, %cst_10 {dimension_numbers = #tpu.dot_dimension_numbers<[1], [0], [0], [1], [0, 0, 1, 1], [], []>} : vector<16x16xf32>, vector<16x128xf32>, vector<16x128xf32> -> vector<16x128xf32>
    %11 = arith.addf %7, %10 : vector<16x128xf32>
    %c0_11 = arith.constant 0 : index
    %c0_12 = arith.constant 0 : index
    %12 = vector.load %arg8[%c0_11, %c0_12] : memref<16x128xf32, #tpu.memory_space<vmem>>, vector<16x128xf32>
    tpu.vector_store %arg8[%c0_11, %c0_12], %11 {strides = array<i32>} : memref<16x128xf32, #tpu.memory_space<vmem>>, vector<16x128xf32>,
    %c0_i32_13 = arith.constant 0 : i32
    %13 = arith.cmpi eq, %arg2, %c0_i32_13 : i32
    %14 = arith.extui %13 : i1 to i32
    %c0_i32_14 = arith.constant 0 : i32
    %15 = arith.cmpi ne, %14, %c0_i32_14 : i32
    scf.if %15 {
      %c0_15 = arith.constant 0 : index
      %c0_16 = arith.constant 0 : index
      %16 = vector.load %arg8[%c0_15, %c0_16] : memref<16x128xf32, #tpu.memory_space<vmem>>, vector<16x128xf32>
      %17 = vector.extract_strided_slice %16 {offsets = [0, 32], sizes = [16, 1], strides = [1, 1]} : vector<16x128xf32> to vector<16x1xf32>
      %cst_17 = arith.constant 1.000000e+00 : f32
      %18 = vector.broadcast %cst_17 : f32 to vector<16x1xf32>
      %19 = arith.addf %17, %18 : vector<16x1xf32>
      %20 = tpu.reciprocal %19 {approx = true} : vector<16x1xf32> -> vector<16x1xf32>
      %21 = vector.broadcast %20 : vector<16x1xf32> to vector<16x128xf32>
      %22 = arith.mulf %16, %21 : vector<16x128xf32>
      %c0_18 = arith.constant 0 : index
      %c0_19 = arith.constant 0 : index
      %23 = vector.load %arg6[%c0_18, %c0_19] : memref<1x128xf32, #tpu.memory_space<vmem>>, vector<1x128xf32>
      %24 = vector.broadcast %23 : vector<1x128xf32> to vector<16x128xf32>
      %25 = arith.addf %22, %24 : vector<16x128xf32>
      %c0_20 = arith.constant 0 : index
      %c0_21 = arith.constant 0 : index
      %c0_22 = arith.constant 0 : index
      %26 = vector.load %arg7[%c0_20, %c0_21, %c0_22] : memref<1x16x128xf32, #tpu.memory_space<vmem>>, vector<1x16x128xf32>
      %27 = vector.shape_cast %26 : vector<1x16x128xf32> to vector<16x128xf32>
      %28 = vector.shape_cast %25 : vector<16x128xf32> to vector<1x16x128xf32>
      tpu.vector_store %arg7[%c0_20, %c0_21, %c0_22], %28 {strides = array<i32>} : memref<1x16x128xf32, #tpu.memory_space<vmem>>, vector<1x16x128xf32>,
    } else {
    }
    return
  }
  func.func @transform_0(%arg0: i32, %arg1: i32, %arg2: i32) -> (i32, i32, i32) {
    %c0_i32 = arith.constant 0 : i32
    %c0_i32_0 = arith.constant 0 : i32
    return %arg0, %arg2, %c0_i32 : i32, i32, i32
  }
  func.func @transform_1(%arg0: i32, %arg1: i32, %arg2: i32) -> (i32, i32, i32) {
    %c0_i32 = arith.constant 0 : i32
    return %arg0, %arg1, %arg2 : i32, i32, i32
  }
  func.func @transform_2(%arg0: i32, %arg1: i32, %arg2: i32) -> (i32, i32) {
    %c0_i32 = arith.constant 0 : i32
    %c0_i32_0 = arith.constant 0 : i32
    %c0_i32_1 = arith.constant 0 : i32
    return %c0_i32, %c0_i32_0 : i32, i32
  }
  func.func @transform_3(%arg0: i32, %arg1: i32, %arg2: i32) -> (i32, i32) {
    %c0_i32 = arith.constant 0 : i32
    %c0_i32_0 = arith.constant 0 : i32
    %c0_i32_1 = arith.constant 0 : i32
    return %c0_i32, %c0_i32_0 : i32, i32
  }
  func.func @transform_4(%arg0: i32, %arg1: i32, %arg2: i32) -> (i32, i32, i32) {
    %c0_i32 = arith.constant 0 : i32
    %c0_i32_0 = arith.constant 0 : i32
    return %arg0, %arg1, %c0_i32 : i32, i32, i32
  }
}

</mosaic_0001>

<bundles_post_ra>
// kernel: tpu_custom_call.1
= control target key start
LH: loop header
LB: loop body
LE: loop exit
PB: predicated region body
PF: predicated region fallthrough
CT: control target
= control target key end

     0   :  { %s1275_s0 = inlined_call_operand.hbm [shape: f32[2,16,128], index: 0, kind: input, shape index: {}]   ;;  %s1276_s1 = inlined_call_operand.hbm [shape: f32[2,16,16], index: 1, kind: input, shape index: {}]   ;;  %s1277_s2 = inlined_call_operand.hbm [shape: f32[128,128], index: 2, kind: input, shape index: {}]   ;;  %s1278_s3 = inlined_call_operand.vmem [shape: f32[1,128], index: 3, kind: input, shape index: {}]   ;;  %s1279_s4 = inlined_call_operand.hbm [shape: f32[2,16,128], index: 4, kind: output, shape index: {}]  }
   0x1   :  { %1286 = sst [smem:[#allocation16_spill]] %s1277_s2 }
   0x2   :  { %9 = vsyncpa [#allocation4], 0 }
   0x3   :  { %11 = vsyncpa [#allocation4 + $0x1], 0 }
   0x4   :  { %12 = vsyncpa [#allocation7], 0 }
   0x5   :  { %14 = vsyncpa [#allocation7 + $0x1], 0 }
   0x6   :  { %15 = vsyncpa [#allocation5], 0 }
   0x7   :  { %17 = vsyncpa [#allocation5 + $0x1], 0  ;;  %s1053_s15 = smov 0   ;;  %s1055_s16 = smov 0  }
   0x8   :  { %s1057_s17 = smov 0   ;;  %s1059_s18 = smov 0  }
   0x9   :  { %s1061_s19 = smov 0   ;;  %s1063_s20 = smov 0  }
   0xa LB: > { %1287 = sst [smem:[#allocation14_spill]] %s1013_s19  ;;  %s1084_s21 = sadd.s32 4294967295, %s1017_s20   ;;  %s1017_s20 = sphi %s1063_s20, %s23_s20   ;;  %s1013_s19 = sphi %s1061_s19, %s1303_s19   ;;  %s1009_s18 = sphi %s1059_s18, %s1302_s18   ;;  %s1005_s17 = sphi %s1057_s17, %s1306_s17   ;;  %s1001_s16 = sphi %s1055_s16, %s1305_s16   ;;  %s997_s15 = sphi %s1053_s15, %s1304_s15  }
   0xb   : > { %s669_s22 = sadd.s32 4294967294, %s1017_s20   ;;  %p64_p0 = scmp.ne.s32.totalorder %s1001_s16, %s997_s15 }
   0xc   : > { %p65_p1 = scmp.eq.s32.totalorder %s1084_s21, 0  ;;  %p168_p3 = scmp.eq.s32.totalorder %s669_s22, 1 }
   0xd   : > { %p670_p5 = scmp.ge.s32.totalorder %s1017_s20, 1  ;;  %p175_p7 = scmp.lt.s32.totalorder %s1017_s20, 3 }
   0xe   : > { %p1093_p4 = por %p65_p1, %p64_p0  ;;  %p1098_p6 = por %p168_p3, %p64_p0 }
   0xf   : > { %p1103_p8 = pnand %p670_p5, %p175_p7  ;;  %s1019_s26 = smov [#allocation8]  }
  0x10   : > { %s1289_s24 = scalar_select %p1098_p6, 1, 0 }
  0x11   : > { %s187_s27 = sshll.u32 %s1019_s26, 4  ;;  %p769_p9 = pneg %p1103_p8  ;;  %s188_s27 = int_to_ptr.vmem [resolvable:$true] %s187_s27 }
  0x12   : > { %s42_s29 = sadd.s32 1, %s1013_s19  ;;  %s858_s30 = scalar_lea.vmem %s188_s27, 2048 }
  0x13   : > { %p1112_p11 = pnand %p769_p9, %p65_p1  ;;  %p859_p13 = scmp.ne.s32.totalorder %s188_s27, %s858_s30 }
  0x14   : > { %p866_p5 = scmp.lt.s32.totalorder %s188_s27, %s188_s27  ;;  %p867_p7 = scmp.lt.s32.totalorder %s858_s30, %s858_s30 }
  0x15   : > { %p849_p12 = pneg %p1112_p11 }
  0x16   : > { %p868_p2 = por %p867_p7, %p866_p5 }
  0x17   : > { %p861_p0 = pnand %p859_p13, %p849_p12 }
  0x19   : > { %p862_p3 = pneg %p861_p0 }
  0x1b   : > { %p869_p6 = pnand %p868_p2, %p862_p3 }
  0x1d   : > { %872 = shalt.err (!%p869_p6)
}
  0x1e   : > { %s1280_s5 = smov 128   ;;  %s1282_s6 = smov 8  }
  0x1f   : > { %s1292_s2 = sld [smem:[#allocation16_spill]]  ;;  %p44_p2 = scmp.ge.s32.totalorder %s42_s29, 2 }
  0x20   : > { %s51_s9 = sadd.s32 1, %s1005_s17  ;;  %p58_p6 = scmp.ne.s32.totalorder %s1005_s17, %s1001_s16 }
  0x21   : > { %p59_p9 = scmp.eq.s32.totalorder %s1017_s20, 0  ;;  %s1308_s29 = smov (%p44_p2, %s42_s29), 0 }
  0x22   : > { %1293 = sst [smem:[#allocation15_spill]] %s1308_s29  ;;  %p1295_p13 = scmp.eq.s32.totalorder %s1084_s21, 1 }
  0x23   : > { %p1133_p12 = por %p59_p9, %p58_p6  ;;  %s46_s12 = ssub.s32 %s1013_s19, %s1308_s29 }
  0x24   : > { %p1139_p0 = por %p1295_p13, %p58_p6  ;;  %p785_p3 = scmp.lt.s32.totalorder %s1017_s20, 2 }
  0x25   : > { %772 = dma.hbm_to_vmem [thread:$0]  (!%p1112_p11), %s1292_s2, 2048, %s188_s27, [#allocation7], %s1280_s5, %s1280_s5, %s1282_s6  }
  0x26   : > { %p49_p11 = scmp.eq.s32.totalorder %s46_s12, 0  ;;  %s204_s13 = sand.u32 1, %s1005_s17  }
  0x27   : > { %s673_s14 = sshll.u32 %s204_s13, 4  ;;  %s692_s26 = sshll.u32 %s1013_s19, 8 }
  0x28   : > { %s1148_s22 = scalar_select %p49_p11, %s1005_s17, %s51_s9  }
  0x29   : > { %s216_s30 = scalar_lea.hbm %s1275_s0, %s692_s26  ;;  %s208_s7 = scalar_lea.vmem [#allocation3], %s673_s14 }
  0x2a   : > { %s217_s8 = sshll.u32 %s208_s7, 4  ;;  %p1156_p5 = pnand %p785_p3, %p1133_p12  ;;  %s218_s8 = int_to_ptr.vmem [resolvable:$true] %s217_s8 }
  0x2b   : > { %s1163_s9 = scalar_lea.hbm %s1276_s1, %s692_s26  ;;  %s231_s12 = scalar_lea.vmem [#allocation6], %s673_s14 }
  0x2c   : > { %s241_s29 = sshll.u32 %s231_s12, 4  ;;  %s205_s19 = scalar_lea.sflag [#allocation4], %s204_s13  ;;  %s242_s29 = int_to_ptr.vmem [resolvable:$true] %s241_s29 }
  0x2d   : > { %p875_p7 = pneg %p1156_p5  ;;  %s886_s27 = scalar_lea.vmem %s218_s8, 256 }
  0x2e   : > { %p887_p2 = scmp.ne.s32.totalorder %s218_s8, %s886_s27  ;;  %s1022_s10 = smov [#allocation3]  }
  0x2f   : > { %s891_s28 = sshll.u32 %s1022_s10, 4  ;;  %s892_s28 = int_to_ptr.vmem [resolvable:$false] %s891_s28 }
  0x30   : > { %p889_p6 = pnand %p887_p2, %p875_p7  ;;  %s893_s7 = scalar_lea.vmem %s892_s28, 512 }
  0x31   : > { %p894_p12 = scmp.lt.s32.totalorder %s218_s8, %s892_s28  ;;  %p895_p13 = scmp.lt.s32.totalorder %s893_s7, %s886_s27 }
  0x32   : > { %p890_p9 = pneg %p889_p6 }
  0x33   : > { %p896_p3 = por %p895_p13, %p894_p12 }
  0x35   : > { %p897_p11 = pnand %p896_p3, %p890_p9 }
  0x37   : > { %900 = shalt.err (!%p897_p11)
}
  0x38   : > { %s1298_s2 = smov 8   ;;  %s1299_s6 = smov 128  }
  0x39   : > { %776 = dma.hbm_to_vmem [thread:$0]  (!%p1156_p5), %s216_s30, 256, %s218_s8, %s205_s19, %s1299_s6, %s1299_s6, %s1298_s2  }
  0x3a   : > { %s227_s13 = sand.u32 1, %s1017_s20   ;;  %s914_s26 = scalar_lea.vmem %s242_s29, 256 }
  0x3b   : > { %s228_s14 = scalar_lea.sflag [#allocation7], %s227_s13  ;;  %p915_p2 = scmp.ne.s32.totalorder %s242_s29, %s914_s26 }
  0x3c   : > { %s1023_s12 = smov [#allocation6]  }
  0x3d   : > { %p917_p6 = pnand %p915_p2, %p875_p7  ;;  %s919_s27 = sshll.u32 %s1023_s12, 4  ;;  %s920_s27 = int_to_ptr.vmem [resolvable:$false] %s919_s27 }
  0x3e   : > { %s921_s10 = scalar_lea.vmem %s920_s27, 512  ;;  %p922_p9 = scmp.lt.s32.totalorder %s242_s29, %s920_s27 }
  0x3f   : > { %p918_p10 = pneg %p917_p6  ;;  %p923_p12 = scmp.lt.s32.totalorder %s921_s10, %s914_s26 }
  0x41   : > { %p924_p13 = por %p923_p12, %p922_p9 }
  0x43   : > { %p925_p3 = pnand %p924_p13, %p918_p10 }
  0x45   : > { %928 = shalt.err (!%p925_p3)
}
  0x46   : > { %779 = dma.hbm_to_vmem [thread:$0]  (!%p1156_p5), %s1163_s9, 256, %s242_s29, %s228_s14, %s1299_s6, %s1299_s6, %s1298_s2  }
  0x47   : > { %253 = sbr.rel (%p1103_p8) target bundleno = 669 (0x29d), region = 36  ;;  %s1188_s19 = sand.u32 (!%p1103_p8), 1, %s1001_s16  }
  0x48   : > { %s1191_s30 = sshll.u32 (!%p1103_p8), %s1188_s19, 4  ;;  %s256_s8 = scalar_lea.sflag (!%p1103_p8), [#allocation4], %s1188_s19 }
  0x49   : > { %s259_s28 = scalar_lea.vmem (!%p1103_p8), [#allocation3], %s1191_s30 }
  0x4c   : > { %980 = dma.done.wait (%p1093_p4), %s256_s8, 256  }
  0x4d   : > { %982 = vsyncadd (%p1093_p4), %s256_s8, 4294967040  ;;  %s264_s25 = sand.u32 1, %s1084_s21   ;;  %s268_s5 = scalar_lea.vmem [#allocation6], %s1191_s30 }
  0x4e   : > { %s265_s29 = scalar_lea.sflag [#allocation7], %s264_s25 }
  0x4f   : > { %984 = dma.done.wait (%p1093_p4), %s265_s29, 256  }
  0x50   : > { %986 = vsyncadd (%p1093_p4), %s265_s29, 4294967040 }
  0x51   : > { %988 = dma.done.wait (%p65_p1), [#allocation7], 2048  }
  0x52   : > { %990 = vsyncadd (%p65_p1), [#allocation7], 4294965248  ;;  %v328_v0 = vld [vmem:[#allocation8 + $0x78] sm:$0xff]  ;;  %v327_v1 = vld [vmem:[#allocation8 + $0x70] sm:$0xff]  ;;  %vm408_vm0 = vcmask 130048   ;;  %v1024_v22 = vmov 32  }
  0x53   : > { %717 = vmatprep.subr.mxu0 %v328_v0  ;;  %v326_v2 = vld [vmem:[#allocation8 + $0x68] sm:$0xff]  ;;  %v325_v3 = vld [vmem:[#allocation8 + $0x60] sm:$0xff]  ;;  %v324_v5 = vld [vmem:[#allocation8 + $0x58] sm:$0xff]  ;;  %842 = vset.pattern.permute.xlu0 %v1024_v22  ;;  %s301_s9 = scalar_lea.vmem [#allocation9], %s1191_s30  ;;  %s694_s2 = sshll.u32 %s1009_s18, 8 }
  0x54   : > { %718 = vmatpush3.msra.mxu0 %v328_v0  ;;  %v311_v4 = vld [vmem:[%s259_s28] sm:$0xff]  ;;  %v322_v7 = vld [vmem:[#allocation8 + $0x48] sm:$0xff]  ;;  %v320_v9 = vld [vmem:[#allocation8 + $0x38] sm:$0xff]  ;;  %s542_s7 = sshll.u32 %s301_s9, 4  ;;  %s1227_s14 = scalar_lea.hbm %s1279_s4, %s694_s2  ;;  %s1222_s7 = int_to_ptr.vmem [resolvable:$true] %s542_s7 }
  0x55   : > { %719 = vmatprep.subr.mxu0 %v327_v1  ;;  %749 = vmatprep.mubr.f32.mxu0 %v311_v4  ;;  %v323_v6 = vld [vmem:[#allocation8 + $0x50] sm:$0xff]  ;;  %v321_v8 = vld [vmem:[#allocation8 + $0x40] sm:$0xff]  ;;  %v318_v11 = vld [vmem:[#allocation8 + $0x28] sm:$0xff]  ;;  %s527_s26 = scalar_lea.sflag [#allocation5], %s1188_s19  ;;  %s929_s12 = scalar_lea.vmem %s1222_s7, 256 }
  0x56   : > { %720 = vmatpush3.msra.mxu0 %v327_v1  ;;  %v319_v10 = vld [vmem:[#allocation8 + $0x30] sm:$0xff]  ;;  %v317_v12 = vld [vmem:[#allocation8 + $0x20] sm:$0xff]  ;;  %v316_v13 = vld [vmem:[#allocation8 + $0x18] sm:$0xff]  ;;  %p930_p1 = scmp.ne.s32.totalorder %s1222_s7, %s929_s12  ;;  %s1025_s18 = smov [#allocation9]  }
  0x57   : > { %721 = vmatprep.subr.mxu0 %v326_v2  ;;  %v315_v14 = vld [vmem:[#allocation8 + $0x10] sm:$0xff]  ;;  %v314_v15 = vld [vmem:[#allocation8 + $0x8] sm:$0xff]  ;;  %v313_v16 = vld [vmem:[#allocation8] sm:$0xff]  ;;  %s933_s27 = sshll.u32 %s1025_s18, 4  ;;  %s934_s27 = int_to_ptr.vmem [resolvable:$false] %s933_s27 }
  0x58   : > { %722 = vmatpush3.msra.mxu0 %v326_v2  ;;  %v312_v17 = vld [vmem:[%s259_s28 + $0x8] sm:$0xff]  ;;  %v406_v18 = vld [vmem:[%s268_s5] sm:$0xff]  ;;  %p931_p4 = pnand %p930_p1, %p1139_p0  ;;  %s935_s10 = scalar_lea.vmem %s934_s27, 512 }
  0x59   : > { %723 = vmatprep.subr.mxu0 %v325_v3  ;;  %756 = vmatprep.mubr.msk.f32.mxu1 %vm408_vm0, %v406_v18  ;;  %v407_v21 = vld [vmem:[%s268_s5 + $0x8] sm:$0xff]  ;;  %v686_v29 = vld [vmem:[%s1278_s3] ss:$0 sm:$0xff]  ;;  %p936_p10 = scmp.lt.s32.totalorder %s1222_s7, %s934_s27  ;;  %p937_p5 = scmp.lt.s32.totalorder %s935_s10, %s929_s12 }
  0x5a   : > { %724 = vmatpush3.msra.mxu0 %v325_v3  ;;  %p932_p8 = pneg %p931_p4 }
  0x5b   : > { %725 = vmatprep.subr.mxu0 %v324_v5  ;;  %p938_p7 = por %p937_p5, %p936_p10 }
  0x5c   : > { %726 = vmatpush3.msra.mxu0 %v324_v5 }
  0x5d   : > { %727 = vmatprep.subr.mxu0 %v323_v6  ;;  %p939_p11 = pnand %p938_p7, %p932_p8 }
  0x5e   : > { %728 = vmatpush3.msra.mxu0 %v323_v6 }
  0x5f   : > { %729 = vmatprep.subr.mxu0 %v322_v7 }
  0x60   : > { %730 = vmatpush3.msra.mxu0 %v322_v7 }
  0x61   : > { %731 = vmatprep.subr.mxu0 %v321_v8 }
  0x62   : > { %732 = vmatpush3.msra.mxu0 %v321_v8 }
  0x63   : > { %733 = vmatprep.subr.mxu0 %v320_v9 }
  0x64   : > { %734 = vmatpush3.msra.mxu0 %v320_v9 }
  0x65   : > { %735 = vmatprep.subr.mxu0 %v319_v10 }
  0x66   : > { %736 = vmatpush3.msra.mxu0 %v319_v10 }
  0x67   : > { %737 = vmatprep.subr.mxu0 %v318_v11 }
  0x68   : > { %738 = vmatpush3.msra.mxu0 %v318_v11 }
  0x69   : > { %739 = vmatprep.subr.mxu0 %v317_v12 }
  0x6a   : > { %740 = vmatpush3.msra.mxu0 %v317_v12 }
  0x6b   : > { %741 = vmatprep.subr.mxu0 %v316_v13 }
  0x6c   : > { %742 = vmatpush3.msra.mxu0 %v316_v13 }
  0x6d   : > { %743 = vmatprep.subr.mxu0 %v315_v14 }
  0x6e   : > { %744 = vmatpush3.msra.mxu0 %v315_v14 }
  0x6f   : > { %745 = vmatprep.subr.mxu0 %v314_v15 }
  0x70   : > { %746 = vmatpush3.msra.mxu0 %v314_v15 }
  0x71   : > { %747 = vmatprep.subr.mxu0 %v313_v16 }
  0x72   : > { %748 = vmatpush3.msra.mxu0 %v313_v16 }
  0x73   : > { %750 = vmatmul.mubr.f32.vlgmr.msra.gmra.mxu0 %v312_v17 }
 0x133   : > { %v751_v19 = vpop.f32.mrf.mxu0 }
 0x134   : > { %752 = vmatprep.subr.mxu1 %v751_v19 }
 0x135   : > { %v395_v20 = vpop.f32.mrf.mxu0  ;;  %753 = vmatpush3.msra.mxu1 %v751_v19 }
 0x136   : > { %754 = vmatprep.subr.mxu1 %v395_v20 }
 0x137   : > { %755 = vmatpush3.msra.mxu1 %v395_v20 }
 0x138   : > { %757 = vmatmul.mubr.msk.f32.vlgmr.msra.gmra.mxu1 %vm408_vm0, %v407_v21 }
 0x1f8   : > { %v758_v23 = vpop.f32.mrf.mxu1 }
 0x1f9   : > { %v500_v26 = vadd.f32 1.0, %v758_v23 }
 0x1fa   : > { %v481_v24 = vpop.f32.mrf.mxu1 }
 0x1fb   : > { %v499_v25 = vadd.f32 1.0, %v481_v24 }
 0x1fd   : > { %843 = vrcp.f32 %v499_v25 }
 0x1fe   : > { %845 = vrcp.f32 %v500_v26 }
 0x20a   : > { %v844_v27 = vpop.eup %843 }
 0x20b   : > { %505 = vperm.xlu0 %842, %v844_v27   ;;  %v846_v28 = vpop.eup %845 }
 0x20f   : > { %510 = vperm.xlu0 %842, %v846_v28  }
 0x286   : > { %v506_v30 = vpop.permute.xlu0 %505 }
 0x287   : > { %v513_v31 = vmul.f32 %v506_v30, %v481_v24 }
 0x289   : > { %v522_v32 = vadd.f32 %v686_v29, %v513_v31 }
 0x28a   : > { %v511_v33 = vpop.permute.xlu0 %510 }
 0x28b   : > { %524 = vst [vmem:[%s301_s9] sm:$0xff] %v522_v32  ;;  %v514_v34 = vmul.f32 %v758_v23, %v511_v33 }
 0x28d   : > { %v523_v35 = vadd.f32 %v686_v29, %v514_v34 }
 0x28f   : > { %525 = vst [vmem:[%s301_s9 + $0x8] sm:$0xff] %v523_v35 }
 0x290   : > { %942 = shalt.err (!%p939_p11)
}
 0x291   : > { %s943_s30 = scalar_lea.hbm %s1227_s14, 256  ;;  %s947_s25 = scalar_lea.hbm %s1279_s4, 512 }
 0x292   : > { %p944_p2 = scmp.ne.s32.totalorder %s1227_s14, %s943_s30  ;;  %p948_p12 = scmp.lt.s32.totalorder %s1227_s14, %s1279_s4 }
 0x293   : > { %p949_p13 = scmp.lt.s32.totalorder %s947_s25, %s943_s30 }
 0x294   : > { %p945_p6 = pnand %p944_p2, %p1139_p0 }
 0x295   : > { %p950_p3 = por %p949_p13, %p948_p12 }
 0x296   : > { %p946_p9 = pneg %p945_p6 }
 0x298   : > { %p951_p1 = pnand %p950_p3, %p946_p9 }
 0x29a   : > { %954 = shalt.err (!%p951_p1)
}
 0x29b   : > { %s1026_s21 = smov 128   ;;  %s1027_s23 = smov 8  }
 0x29c   : > { %767 = dma.vmem_to_hbm [thread:$0]  (%p1139_p0), %s1222_s7, 256, %s1227_s14, %s527_s26, %s1026_s21, %s1026_s21, %s1027_s23  }
 0x29d PF: > { %s557_s9 = sand.u32 1, %s997_s15   ;;  %p1300_p4 = scmp.ne.s32.totalorder %s1289_s24, 0 }
 0x29e   : > { %p1301_p8 = scmp.ge.s32.totalorder %s1017_s20, 2  ;;  %s558_s2 = scalar_lea.sflag [#allocation5], %s557_s9 }
 0x2a0   : > { %p781_p10 = pnand %p1301_p8, %p1300_p4 }
 0x2a2   : > { %p782_p5 = pneg %p781_p10 }
 0x2a4   : > { %992 = dma.done.wait (%p782_p5), %s558_s2, 256  }
 0x2a5   : > { %994 = vsyncadd (%p782_p5), %s558_s2, 4294967040  ;;  %s23_s20 = sadd.s32 1, %s1017_s20   ;;  %s1302_s18 = sld [smem:[#allocation14_spill]] }
 0x2a6   : > { %p20_p7 = scmp.ge.s32.totalorder %s23_s20, 4   ;;  %s1303_s19 = sld [smem:[#allocation15_spill]] }
 0x2a7   : > { %s1304_s15 = smov %s1001_s16  ;;  %s1305_s16 = smov %s1005_s17 }
 0x2a8   : > { %s1306_s17 = smov %s1148_s22  ;;  %22 = sbr.rel (!%p20_p7) target bundleno = 10 (0xa), region = 106 }
 0x2ad   :  { %563 = vsyncpa [#allocation4], 1 }
 0x2ae   :  { %565 = vsyncpa [#allocation4 + $0x1], 1 }
 0x2af   :  { %566 = vsyncpa [#allocation7], 1 }
 0x2b0   :  { %568 = vsyncpa [#allocation7 + $0x1], 1 }
 0x2b1   :  { %569 = vsyncpa [#allocation5], 1 }
 0x2b2   :  { %571 = vsyncpa [#allocation5 + $0x1], 1 }

</bundles_post_ra>
